<compile_context>
chip_gen: v7x
topology: tpu7x:2x2x1
jax: 0.10.0
libtpu: 0.0.40
codegen_flags: <defaults>
</compile_context>

<pallas_src>
import functools
import math

import jax
import jax.numpy as jnp
from jax import lax
from jax.experimental import pallas as pl
from jax.experimental.pallas import tpu as pltpu


# ---------------------------------------------------------------------------
# Generic Linear kernel: o = x @ W + b   (used for fc_o and as a fallback)
# ---------------------------------------------------------------------------
def _linear_kernel(x_ref, w_ref, b_ref, o_ref, *, compute_dtype):
    acc = jnp.dot(x_ref[...].astype(compute_dtype),
                  w_ref[...].astype(compute_dtype),
                  preferred_element_type=jnp.float32)
    o_ref[...] = (acc + b_ref[...]).astype(o_ref.dtype)


def linear(x, w, b, *, compute_dtype=None, out_dtype=None, tm=256, tn=512):
    """x: (M, K), w: (K, N), b: (N,) -> (M, N). K is kept whole per block."""
    M, K = x.shape
    N = w.shape[1]
    cd = compute_dtype if compute_dtype is not None else x.dtype
    od = out_dtype if out_dtype is not None else x.dtype
    tm = M if M <= tm else tm          # 256 is a multiple of 8; ragged edge OK
    tn = N if N <= tn else tn          # 512 is a multiple of 128; ragged edge OK
    grid = (pl.cdiv(M, tm), pl.cdiv(N, tn))
    return pl.pallas_call(
        functools.partial(_linear_kernel, compute_dtype=cd),
        out_shape=jax.ShapeDtypeStruct((M, N), od),
        grid_spec=pltpu.PrefetchScalarGridSpec(
            num_scalar_prefetch=0,
            grid=grid,
            in_specs=[
                pl.BlockSpec((tm, K), lambda i, j: (i, 0)),
                pl.BlockSpec((K, tn), lambda i, j: (0, j)),
                pl.BlockSpec((1, tn), lambda i, j: (0, j)),
            ],
            out_specs=pl.BlockSpec((tm, tn), lambda i, j: (i, j)),
        ),
        compiler_params=pltpu.CompilerParams(
            dimension_semantics=("parallel", "parallel")),
    )(x, w, b.reshape(1, N).astype(jnp.float32))


# ---------------------------------------------------------------------------
# Fused Q/K/V projection: one pallas_call for the three input projections
# ---------------------------------------------------------------------------
def _qkv_proj_kernel(xq_ref, xk_ref, xv_ref, wq_ref, wk_ref, wv_ref,
                     bq_ref, bk_ref, bv_ref, q_ref, k_ref, v_ref, *,
                     compute_dtype):
    def proj(x_ref, w_ref, b_ref, o_ref):
        acc = jnp.dot(x_ref[...].astype(compute_dtype),
                      w_ref[...].astype(compute_dtype),
                      preferred_element_type=jnp.float32)
        o_ref[...] = (acc + b_ref[...]).astype(o_ref.dtype)

    proj(xq_ref, wq_ref, bq_ref, q_ref)
    proj(xk_ref, wk_ref, bk_ref, k_ref)
    proj(xv_ref, wv_ref, bv_ref, v_ref)


def fused_qkv_projection(xq, xk, xv, wq, wk, wv, bq, bk, bv, *,
                         compute_dtype, out_dtype, tm=256):
    """Computes the three projections in a single kernel (requires equal M)."""
    M, d_model = xq.shape
    Nq, Nv = wq.shape[1], wv.shape[1]
    tm = M if M <= tm else tm
    grid = (pl.cdiv(M, tm),)

    def row(n):
        return pl.BlockSpec((tm, n), lambda i: (i, 0))

    def full(n):
        return pl.BlockSpec((d_model, n), lambda i: (0, 0))

    def bias(n):
        return pl.BlockSpec((1, n), lambda i: (0, 0))

    return pl.pallas_call(
        functools.partial(_qkv_proj_kernel, compute_dtype=compute_dtype),
        out_shape=(jax.ShapeDtypeStruct((M, Nq), out_dtype),
                   jax.ShapeDtypeStruct((M, Nq), out_dtype),
                   jax.ShapeDtypeStruct((M, Nv), out_dtype)),
        grid_spec=pltpu.PrefetchScalarGridSpec(
            num_scalar_prefetch=0,
            grid=grid,
            in_specs=[row(d_model), row(d_model), row(d_model),
                      full(Nq), full(Nq), full(Nv),
                      bias(Nq), bias(Nq), bias(Nv)],
            out_specs=[row(Nq), row(Nq), row(Nv)],
        ),
        compiler_params=pltpu.CompilerParams(dimension_semantics=("parallel",)),
    )(xq, xk, xv, wq, wk, wv,
      bq.reshape(1, Nq).astype(jnp.float32),
      bk.reshape(1, Nq).astype(jnp.float32),
      bv.reshape(1, Nv).astype(jnp.float32))


# ---------------------------------------------------------------------------
# Head-group-blocked flash attention (no HBM transposes around it)
# ---------------------------------------------------------------------------
def _pick_head_block(h, d_k, d_v, max_group_width=512):
    """Largest head-group hb with legal block dims (hb == h or hb % 8 == 0)
    and a modest per-step working set."""
    width = max(d_k, d_v)
    legal = [hb for hb in range(1, h + 1)
             if h % hb == 0 and (hb == h or hb % 8 == 0)]
    fitting = [hb for hb in legal if hb * width <= max_group_width]
    return max(fitting) if fitting else min(legal)


def _mha_flash_kernel(q_ref, k_ref, v_ref, o_ref, m_sc, l_sc, acc_sc, *,
                      scale, nk, tk, kv_mask, approx_recip):
    kv = pl.program_id(3)

    @pl.when(kv == 0)
    def _init():
        m_sc[...] = jnp.full_like(m_sc, -jnp.inf)
        l_sc[...] = jnp.zeros_like(l_sc)
        acc_sc[...] = jnp.zeros_like(acc_sc)

    # Refs: q (tq, hb, d_k), k (tk, hb, d_k), v (tk, hb, d_v) -- head groups
    # sliced straight out of the projection layout by the BlockSpecs.
    q = q_ref[...] * scale          # fold 1/sqrt(d_k) into the small q tile
    k = k_ref[...]
    v = v_ref[...]

    # Scores batched over the head group: (hb, tq, tk), f32 MXU accumulation.
    s = jnp.einsum("qhd,khd->hqk", q, k, preferred_element_type=jnp.float32)

    if kv_mask:  # static: only traced when nk % tk != 0 (ragged last kv tile)
        col = kv * tk + lax.broadcasted_iota(jnp.int32, s.shape, 2)
        s = jnp.where(col < nk, s, -jnp.inf)

    m_prev = m_sc[...]                                        # (hb, tq, 1)
    m_new = jnp.maximum(m_prev, s.max(axis=-1, keepdims=True))
    alpha = jnp.exp(m_prev - m_new)
    p = jnp.exp(s - m_new)                                    # (hb, tq, tk) f32
    l_sc[...] = alpha * l_sc[...] + p.sum(axis=-1, keepdims=True)
    pv = jnp.einsum("hqk,khd->hqd", p.astype(v.dtype), v,
                    preferred_element_type=jnp.float32)       # (hb, tq, d_v)
    acc_sc[...] = alpha * acc_sc[...] + pv
    m_sc[...] = m_new

    @pl.when(kv == pl.num_programs(3) - 1)
    def _finalize():
        if approx_recip:
            out = acc_sc[...] * pl.reciprocal(l_sc[...], approx=True)
        else:
            out = acc_sc[...] / l_sc[...]
        hb = out.shape[0]
        for hh in range(hb):        # static unroll: one (tq, d_v) slab per head
            o_ref[:, hh, :] = out[hh].astype(o_ref.dtype)


def mha_flash_attention(q, k, v, *, h, d_k, d_v, scale, out_dtype,
                        tq=128, tk=512, approx_recip=False):
    """q: (b_s, nq, h, d_k), k: (b_s, nk, h, d_k), v: (b_s, nk, h, d_v)
       -> (b_s, nq, h, d_v), all in projection-native layout."""
    b_s, nq = q.shape[0], q.shape[1]
    nk = k.shape[1]
    hb = _pick_head_block(h, d_k, d_v)
    tq = nq if nq <= tq else tq
    tk = nk if nk <= tk else tk
    kv_mask = (nk % tk) != 0
    grid = (b_s, h // hb, pl.cdiv(nq, tq), pl.cdiv(nk, tk))
    kernel = functools.partial(_mha_flash_kernel, scale=scale, nk=nk, tk=tk,
                               kv_mask=kv_mask, approx_recip=approx_recip)
    return pl.pallas_call(
        kernel,
        out_shape=jax.ShapeDtypeStruct((b_s, nq, h, d_v), out_dtype),
        grid_spec=pltpu.PrefetchScalarGridSpec(
            num_scalar_prefetch=0,
            grid=grid,
            in_specs=[
                pl.BlockSpec((None, tq, hb, d_k),
                             lambda b, g, i, j: (b, i, g, 0)),
                pl.BlockSpec((None, tk, hb, d_k),
                             lambda b, g, i, j: (b, j, g, 0)),
                pl.BlockSpec((None, tk, hb, d_v),
                             lambda b, g, i, j: (b, j, g, 0)),
            ],
            out_specs=pl.BlockSpec((None, tq, hb, d_v),
                                   lambda b, g, i, j: (b, i, g, 0)),
            scratch_shapes=[
                pltpu.VMEM((hb, tq, 1), jnp.float32),    # running max  m_i
                pltpu.VMEM((hb, tq, 1), jnp.float32),    # running sum  l_i
                pltpu.VMEM((hb, tq, d_v), jnp.float32),  # output accumulator
            ],
        ),
        compiler_params=pltpu.CompilerParams(
            dimension_semantics=("parallel", "parallel", "parallel",
                                 "arbitrary")),
    )(q, k, v)


# ---------------------------------------------------------------------------
# Module: params + forward
# ---------------------------------------------------------------------------
def init_params(key, d_model, d_k, d_v, h):
    ks = jax.random.split(key, 4)

    def w(k_, fan_in, fan_out):
        # matches init_weights(): Linear weights ~ normal(std=0.001), bias = 0
        return jax.random.normal(k_, (fan_in, fan_out), jnp.float32) * 0.001

    return {
        "wq": w(ks[0], d_model, h * d_k), "bq": jnp.zeros((h * d_k,), jnp.float32),
        "wk": w(ks[1], d_model, h * d_k), "bk": jnp.zeros((h * d_k,), jnp.float32),
        "wv": w(ks[2], d_model, h * d_v), "bv": jnp.zeros((h * d_v,), jnp.float32),
        "wo": w(ks[3], h * d_v, d_model), "bo": jnp.zeros((d_model,), jnp.float32),
    }


def scaled_dot_product_attention(queries, keys, values, params, d_k, d_v, h,
                                 attention_mask=None, attention_weights=None,
                                 compute_dtype=None):
    """queries: (b_s, nq, d_model), keys/values: (b_s, nk, d_model).
    compute_dtype=jnp.bfloat16 selects the bf16-MXU fast path (f32 accum)."""
    # TODO(synk): attention_mask / attention_weights branches and train-mode
    # dropout are not implemented; this is the deterministic eval-mode forward.
    assert attention_mask is None and attention_weights is None

    b_s, nq, d_model = queries.shape
    nk = keys.shape[1]
    cd = compute_dtype if compute_dtype is not None else queries.dtype
    out_dtype = queries.dtype

    xq = queries.reshape(b_s * nq, d_model)
    xk = keys.reshape(b_s * nk, d_model)
    xv = values.reshape(b_s * nk, d_model)

    if nq == nk:
        q2, k2, v2 = fused_qkv_projection(
            xq, xk, xv, params["wq"], params["wk"], params["wv"],
            params["bq"], params["bk"], params["bv"],
            compute_dtype=cd, out_dtype=cd)
    else:   # row counts differ -> three (still tiled) projection calls
        q2 = linear(xq, params["wq"], params["bq"], compute_dtype=cd, out_dtype=cd)
        k2 = linear(xk, params["wk"], params["bk"], compute_dtype=cd, out_dtype=cd)
        v2 = linear(xv, params["wv"], params["bv"], compute_dtype=cd, out_dtype=cd)

    # Free (contiguous) reshapes only; head split/merge lives in the BlockSpecs.
    q4 = q2.reshape(b_s, nq, h, d_k)
    k4 = k2.reshape(b_s, nk, h, d_k)
    v4 = v2.reshape(b_s, nk, h, d_v)

    o4 = mha_flash_attention(
        q4, k4, v4, h=h, d_k=d_k, d_v=d_v, scale=1.0 / math.sqrt(d_k),
        out_dtype=cd,
        approx_recip=(jnp.dtype(cd) != jnp.dtype(jnp.float32)))

    out = linear(o4.reshape(b_s * nq, h * d_v), params["wo"], params["bo"],
                 compute_dtype=cd, out_dtype=out_dtype)
    return out.reshape(b_s, nq, d_model)


# ---------------------------------------------------------------------------
# Pure-JAX reference (for correctness check)
# ---------------------------------------------------------------------------
def _reference(queries, keys, values, params, d_k, d_v, h):
    b_s, nq, d_model = queries.shape
    nk = keys.shape[1]
    q = queries @ params["wq"] + params["bq"]
    k = keys @ params["wk"] + params["bk"]
    v = values @ params["wv"] + params["bv"]
    q = q.reshape(b_s, nq, h, d_k).transpose(0, 2, 1, 3)
    kt = k.reshape(b_s, nk, h, d_k).transpose(0, 2, 3, 1)
    v = v.reshape(b_s, nk, h, d_v).transpose(0, 2, 1, 3)
    att = jnp.matmul(q, kt) / math.sqrt(d_k)
    att = jax.nn.softmax(att, axis=-1)
    out = jnp.matmul(att, v).transpose(0, 2, 1, 3).reshape(b_s, nq, h * d_v)
    return out @ params["wo"] + params["bo"]


if __name__ == "__main__":
    d_model, d_k, d_v, h = 32, 32, 32, 4
    b_s, nq, nk = 2, 8, 8

    key = jax.random.PRNGKey(0)
    kq, kk, kv_, kp = jax.random.split(key, 4)
    queries = jax.random.normal(kq, (b_s, nq, d_model), jnp.float32)
    keys = jax.random.normal(kk, (b_s, nk, d_model), jnp.float32)
    values = jax.random.normal(kv_, (b_s, nk, d_model), jnp.float32)
    params = init_params(kp, d_model, d_k, d_v, h)

    ref = _reference(queries, keys, values, params, d_k, d_v, h)

    # f32 path: validates the kernel logic against the reference.
    out_f32 = scaled_dot_product_attention(
        queries, keys, values, params, d_k, d_v, h, compute_dtype=jnp.float32)
    out_f32 = jax.block_until_ready(out_f32)
    assert out_f32.shape == (b_s, nq, d_model)
    assert out_f32.dtype == queries.dtype
    assert jnp.allclose(out_f32, ref, atol=5e-6, rtol=5e-2), float(
        jnp.max(jnp.abs(out_f32 - ref)))

    # bf16 fast path (bf16 MXU compute, f32 accumulation): looser tolerance.
    out_bf16 = scaled_dot_product_attention(
        queries, keys, values, params, d_k, d_v, h, compute_dtype=jnp.bfloat16)
    out_bf16 = jax.block_until_ready(out_bf16)
    assert out_bf16.shape == (b_s, nq, d_model)
    assert out_bf16.dtype == queries.dtype
    assert bool(jnp.all(jnp.isfinite(out_bf16)))
    assert jnp.allclose(out_bf16, ref, atol=2e-5, rtol=2e-1), float(
        jnp.max(jnp.abs(out_bf16 - ref)))

    print("KERNEL_OK")
</pallas_src>

<mosaic_0001>
module attributes {stable_mosaic.version = 11 : i64} {
  func.func @_qkv_proj_kernel(%arg0: i32, %arg1: memref<16x32xf32, #tpu.memory_space<vmem>>, %arg2: memref<16x32xf32, #tpu.memory_space<vmem>>, %arg3: memref<16x32xf32, #tpu.memory_space<vmem>>, %arg4: memref<32x128xf32, #tpu.memory_space<vmem>>, %arg5: memref<32x128xf32, #tpu.memory_space<vmem>>, %arg6: memref<32x128xf32, #tpu.memory_space<vmem>>, %arg7: memref<1x128xf32, #tpu.memory_space<vmem>>, %arg8: memref<1x128xf32, #tpu.memory_space<vmem>>, %arg9: memref<1x128xf32, #tpu.memory_space<vmem>>, %arg10: memref<16x128xf32, #tpu.memory_space<vmem>>, %arg11: memref<16x128xf32, #tpu.memory_space<vmem>>, %arg12: memref<16x128xf32, #tpu.memory_space<vmem>>) attributes {dimension_semantics = [#tpu.dimension_semantics<parallel>], iteration_bounds = array<i64: 1>, scalar_prefetch = 0 : i64, scratch_operands = 0 : i64, tpu.core_type = #tpu.core_type<tc>, window_params = [{transform_indices = @transform_0, window_bounds = array<i64: 16, 32>}, {transform_indices = @transform_1, window_bounds = array<i64: 16, 32>}, {transform_indices = @transform_2, window_bounds = array<i64: 16, 32>}, {pipeline_mode = #tpu.pipeline_mode<synchronous>, transform_indices = @transform_3, window_bounds = array<i64: 32, 128>}, {pipeline_mode = #tpu.pipeline_mode<synchronous>, transform_indices = @transform_4, window_bounds = array<i64: 32, 128>}, {pipeline_mode = #tpu.pipeline_mode<synchronous>, transform_indices = @transform_5, window_bounds = array<i64: 32, 128>}, {pipeline_mode = #tpu.pipeline_mode<synchronous>, transform_indices = @transform_6, window_bounds = array<i64: 1, 128>}, {pipeline_mode = #tpu.pipeline_mode<synchronous>, transform_indices = @transform_7, window_bounds = array<i64: 1, 128>}, {pipeline_mode = #tpu.pipeline_mode<synchronous>, transform_indices = @transform_8, window_bounds = array<i64: 1, 128>}, {transform_indices = @transform_9, window_bounds = array<i64: 16, 128>}, {transform_indices = @transform_10, window_bounds = array<i64: 16, 128>}, {transform_indices = @transform_11, window_bounds = array<i64: 16, 128>}]} {
    %c0 = arith.constant 0 : index
    %c0_0 = arith.constant 0 : index
    %0 = vector.load %arg1[%c0, %c0_0] : memref<16x32xf32, #tpu.memory_space<vmem>>, vector<16x32xf32>
    %c0_1 = arith.constant 0 : index
    %c0_2 = arith.constant 0 : index
    %1 = vector.load %arg4[%c0_1, %c0_2] : memref<32x128xf32, #tpu.memory_space<vmem>>, vector<32x128xf32>
    %cst = arith.constant dense<0.000000e+00> : vector<16x128xf32>
    %2 = tpu.matmul %0, %1, %cst {dimension_numbers = #tpu.dot_dimension_numbers<[1], [0], [0], [1], [0, 0, 1, 1], [], []>} : vector<16x32xf32>, vector<32x128xf32>, vector<16x128xf32> -> vector<16x128xf32>
    %c0_3 = arith.constant 0 : index
    %c0_4 = arith.constant 0 : index
    %3 = vector.load %arg7[%c0_3, %c0_4] : memref<1x128xf32, #tpu.memory_space<vmem>>, vector<1x128xf32>
    %4 = vector.broadcast %3 : vector<1x128xf32> to vector<16x128xf32>
    %5 = arith.addf %2, %4 : vector<16x128xf32>
    %c0_5 = arith.constant 0 : index
    %c0_6 = arith.constant 0 : index
    %6 = vector.load %arg10[%c0_5, %c0_6] : memref<16x128xf32, #tpu.memory_space<vmem>>, vector<16x128xf32>
    tpu.vector_store %arg10[%c0_5, %c0_6], %5 {strides = array<i32>} : memref<16x128xf32, #tpu.memory_space<vmem>>, vector<16x128xf32>,
    %c0_7 = arith.constant 0 : index
    %c0_8 = arith.constant 0 : index
    %7 = vector.load %arg2[%c0_7, %c0_8] : memref<16x32xf32, #tpu.memory_space<vmem>>, vector<16x32xf32>
    %c0_9 = arith.constant 0 : index
    %c0_10 = arith.constant 0 : index
    %8 = vector.load %arg5[%c0_9, %c0_10] : memref<32x128xf32, #tpu.memory_space<vmem>>, vector<32x128xf32>
    %cst_11 = arith.constant dense<0.000000e+00> : vector<16x128xf32>
    %9 = tpu.matmul %7, %8, %cst_11 {dimension_numbers = #tpu.dot_dimension_numbers<[1], [0], [0], [1], [0, 0, 1, 1], [], []>} : vector<16x32xf32>, vector<32x128xf32>, vector<16x128xf32> -> vector<16x128xf32>
    %c0_12 = arith.constant 0 : index
    %c0_13 = arith.constant 0 : index
    %10 = vector.load %arg8[%c0_12, %c0_13] : memref<1x128xf32, #tpu.memory_space<vmem>>, vector<1x128xf32>
    %11 = vector.broadcast %10 : vector<1x128xf32> to vector<16x128xf32>
    %12 = arith.addf %9, %11 : vector<16x128xf32>
    %c0_14 = arith.constant 0 : index
    %c0_15 = arith.constant 0 : index
    %13 = vector.load %arg11[%c0_14, %c0_15] : memref<16x128xf32, #tpu.memory_space<vmem>>, vector<16x128xf32>
    tpu.vector_store %arg11[%c0_14, %c0_15], %12 {strides = array<i32>} : memref<16x128xf32, #tpu.memory_space<vmem>>, vector<16x128xf32>,
    %c0_16 = arith.constant 0 : index
    %c0_17 = arith.constant 0 : index
    %14 = vector.load %arg3[%c0_16, %c0_17] : memref<16x32xf32, #tpu.memory_space<vmem>>, vector<16x32xf32>
    %c0_18 = arith.constant 0 : index
    %c0_19 = arith.constant 0 : index
    %15 = vector.load %arg6[%c0_18, %c0_19] : memref<32x128xf32, #tpu.memory_space<vmem>>, vector<32x128xf32>
    %cst_20 = arith.constant dense<0.000000e+00> : vector<16x128xf32>
    %16 = tpu.matmul %14, %15, %cst_20 {dimension_numbers = #tpu.dot_dimension_numbers<[1], [0], [0], [1], [0, 0, 1, 1], [], []>} : vector<16x32xf32>, vector<32x128xf32>, vector<16x128xf32> -> vector<16x128xf32>
    %c0_21 = arith.constant 0 : index
    %c0_22 = arith.constant 0 : index
    %17 = vector.load %arg9[%c0_21, %c0_22] : memref<1x128xf32, #tpu.memory_space<vmem>>, vector<1x128xf32>
    %18 = vector.broadcast %17 : vector<1x128xf32> to vector<16x128xf32>
    %19 = arith.addf %16, %18 : vector<16x128xf32>
    %c0_23 = arith.constant 0 : index
    %c0_24 = arith.constant 0 : index
    %20 = vector.load %arg12[%c0_23, %c0_24] : memref<16x128xf32, #tpu.memory_space<vmem>>, vector<16x128xf32>
    tpu.vector_store %arg12[%c0_23, %c0_24], %19 {strides = array<i32>} : memref<16x128xf32, #tpu.memory_space<vmem>>, vector<16x128xf32>,
    return
  }
  func.func @transform_0(%arg0: i32) -> (i32, i32) {
    %c0_i32 = arith.constant 0 : i32
    %c0_i32_0 = arith.constant 0 : i32
    return %arg0, %c0_i32 : i32, i32
  }
  func.func @transform_1(%arg0: i32) -> (i32, i32) {
    %c0_i32 = arith.constant 0 : i32
    %c0_i32_0 = arith.constant 0 : i32
    return %arg0, %c0_i32 : i32, i32
  }
  func.func @transform_2(%arg0: i32) -> (i32, i32) {
    %c0_i32 = arith.constant 0 : i32
    %c0_i32_0 = arith.constant 0 : i32
    return %arg0, %c0_i32 : i32, i32
  }
  func.func @transform_3(%arg0: i32) -> (i32, i32) {
    %c0_i32 = arith.constant 0 : i32
    %c0_i32_0 = arith.constant 0 : i32
    %c0_i32_1 = arith.constant 0 : i32
    return %c0_i32, %c0_i32_0 : i32, i32
  }
  func.func @transform_4(%arg0: i32) -> (i32, i32) {
    %c0_i32 = arith.constant 0 : i32
    %c0_i32_0 = arith.constant 0 : i32
    %c0_i32_1 = arith.constant 0 : i32
    return %c0_i32, %c0_i32_0 : i32, i32
  }
  func.func @transform_5(%arg0: i32) -> (i32, i32) {
    %c0_i32 = arith.constant 0 : i32
    %c0_i32_0 = arith.constant 0 : i32
    %c0_i32_1 = arith.constant 0 : i32
    return %c0_i32, %c0_i32_0 : i32, i32
  }
  func.func @transform_6(%arg0: i32) -> (i32, i32) {
    %c0_i32 = arith.constant 0 : i32
    %c0_i32_0 = arith.constant 0 : i32
    %c0_i32_1 = arith.constant 0 : i32
    return %c0_i32, %c0_i32_0 : i32, i32
  }
  func.func @transform_7(%arg0: i32) -> (i32, i32) {
    %c0_i32 = arith.constant 0 : i32
    %c0_i32_0 = arith.constant 0 : i32
    %c0_i32_1 = arith.constant 0 : i32
    return %c0_i32, %c0_i32_0 : i32, i32
  }
  func.func @transform_8(%arg0: i32) -> (i32, i32) {
    %c0_i32 = arith.constant 0 : i32
    %c0_i32_0 = arith.constant 0 : i32
    %c0_i32_1 = arith.constant 0 : i32
    return %c0_i32, %c0_i32_0 : i32, i32
  }
  func.func @transform_9(%arg0: i32) -> (i32, i32) {
    %c0_i32 = arith.constant 0 : i32
    %c0_i32_0 = arith.constant 0 : i32
    return %arg0, %c0_i32 : i32, i32
  }
  func.func @transform_10(%arg0: i32) -> (i32, i32) {
    %c0_i32 = arith.constant 0 : i32
    %c0_i32_0 = arith.constant 0 : i32
    return %arg0, %c0_i32 : i32, i32
  }
  func.func @transform_11(%arg0: i32) -> (i32, i32) {
    %c0_i32 = arith.constant 0 : i32
    %c0_i32_0 = arith.constant 0 : i32
    return %arg0, %c0_i32 : i32, i32
  }
}

</mosaic_0001>

<bundles_post_ra>
// kernel: tpu_custom_call.1
= control target key start
LH: loop header
LB: loop body
LE: loop exit
PB: predicated region body
PF: predicated region fallthrough
CT: control target
= control target key end

     0   :  { %17 = vsyncpa [#allocation3], 0  ;;  %s1013_s0 = inlined_call_operand.hbm [shape: f32[16,32], index: 0, kind: input, shape index: {}]   ;;  %s1014_s1 = inlined_call_operand.hbm [shape: f32[16,32], index: 1, kind: input, shape index: {}]   ;;  %s1015_s2 = inlined_call_operand.hbm [shape: f32[16,32], index: 2, kind: input, shape index: {}]   ;;  %s1016_s3 = inlined_call_operand.hbm [shape: f32[32,128], index: 3, kind: input, shape index: {}]   ;;  %s1017_s4 = inlined_call_operand.hbm [shape: f32[32,128], index: 4, kind: input, shape index: {}]   ;;  %s1018_s5 = inlined_call_operand.hbm [shape: f32[32,128], index: 5, kind: input, shape index: {}]   ;;  %s1019_s6 = inlined_call_operand.vmem [shape: f32[1,128], index: 6, kind: input, shape index: {}]   ;;  %s1020_s7 = inlined_call_operand.vmem [shape: f32[1,128], index: 7, kind: input, shape index: {}]   ;;  %s1021_s8 = inlined_call_operand.vmem [shape: f32[1,128], index: 8, kind: input, shape index: {}]   ;;  %s1022_s9 = inlined_call_operand.hbm [shape: f32[16,128], index: 9, kind: output, shape index: {0}]   ;;  %s1023_s10 = inlined_call_operand.hbm [shape: f32[16,128], index: 10, kind: output, shape index: {1}]   ;;  %s1024_s11 = inlined_call_operand.hbm [shape: f32[16,128], index: 11, kind: output, shape index: {2}]  }
   0x1   :  { %18 = vsyncpa [#allocation6], 0 }
   0x2   :  { %19 = vsyncpa [#allocation9], 0 }
   0x3   :  { %20 = vsyncpa [#allocation12], 0 }
   0x4   :  { %21 = vsyncpa [#allocation4], 0 }
   0x5   :  { %22 = vsyncpa [#allocation15], 0  ;;  %s764_s17 = smov [#allocation5]   ;;  %s765_s19 = smov [#allocation8]  }
   0x6   :  { %s40_s18 = sshll.u32 %s764_s17, 4  ;;  %s64_s20 = sshll.u32 %s765_s19, 4  ;;  %s41_s18 = int_to_ptr.vmem [resolvable:$true] %s40_s18  ;;  %s835_s20 = int_to_ptr.vmem [resolvable:$true] %s64_s20 }
   0x7   :  { %s554_s23 = scalar_lea.hbm %s1014_s1, 256 }
   0x8   :  { %p555_p0 = scmp.ne.s32.totalorder %s1014_s1, %s554_s23  ;;  %p558_p1 = scmp.lt.u32.totalorder %s554_s23, %s1014_s1 }
   0xa   :  { %p560_p2 = pnand %p558_p1, %p555_p0 }
   0xc   :  { %563 = shalt.err (!%p560_p2)
}
   0xd   :  { %s564_s28 = scalar_lea.vmem %s41_s18, 256  ;;  %p569_p4 = scmp.lt.s32.totalorder %s41_s18, %s41_s18 }
   0xe   :  { %p565_p3 = scmp.ne.s32.totalorder %s41_s18, %s564_s28  ;;  %p570_p5 = scmp.lt.s32.totalorder %s564_s28, %s564_s28 }
  0x10   :  { %p571_p6 = por %p570_p5, %p569_p4 }
  0x12   :  { %p572_p7 = pnand %p571_p6, %p565_p3 }
  0x14   :  { %575 = shalt.err (!%p572_p7)
}
  0x15   :  { %s766_s29 = smov 128   ;;  %s767_s30 = smov 8  }
  0x16   :  { %46 = dma.hbm_to_vmem [thread:$0]  %s1014_s1, 256, %s41_s18, [#allocation6], %s766_s29, %s766_s29, %s767_s30  }
  0x17   :  { %s576_s16 = scalar_lea.hbm %s1016_s3, 512 }
  0x18   :  { %p577_p8 = scmp.ne.s32.totalorder %s1016_s3, %s576_s16  ;;  %p580_p9 = scmp.lt.u32.totalorder %s576_s16, %s1016_s3 }
  0x1a   :  { %p582_p10 = pnand %p580_p9, %p577_p8 }
  0x1c   :  { %585 = shalt.err (!%p582_p10)
}
  0x1d   :  { %s586_s23 = scalar_lea.vmem %s835_s20, 512  ;;  %p591_p12 = scmp.lt.s32.totalorder %s835_s20, %s835_s20 }
  0x1e   :  { %p587_p11 = scmp.ne.s32.totalorder %s835_s20, %s586_s23  ;;  %p592_p13 = scmp.lt.s32.totalorder %s586_s23, %s586_s23 }
  0x20   :  { %p593_p0 = por %p592_p13, %p591_p12 }
  0x22   :  { %p594_p1 = pnand %p593_p0, %p587_p11 }
  0x24   :  { %597 = shalt.err (!%p594_p1)
}
  0x25   :  { %70 = dma.hbm_to_vmem [thread:$0]  %s1016_s3, 512, %s835_s20, [#allocation9], %s766_s29, %s766_s29, %s767_s30  }
  0x26   :  { %s768_s24 = smov [#allocation2]   ;;  %s769_s26 = smov [#allocation7]  }
  0x27   :  { %s28_s25 = sshll.u32 %s768_s24, 4  ;;  %s52_s27 = sshll.u32 %s769_s26, 4  ;;  %s29_s25 = int_to_ptr.vmem [resolvable:$true] %s28_s25  ;;  %s872_s27 = int_to_ptr.vmem [resolvable:$true] %s52_s27 }
  0x28   :  { %s598_s13 = scalar_lea.hbm %s1013_s0, 256 }
  0x29   :  { %p599_p2 = scmp.ne.s32.totalorder %s1013_s0, %s598_s13  ;;  %p602_p3 = scmp.lt.u32.totalorder %s598_s13, %s1013_s0 }
  0x2b   :  { %p604_p4 = pnand %p602_p3, %p599_p2 }
  0x2d   :  { %607 = shalt.err (!%p604_p4)
}
  0x2e   :  { %s608_s3 = scalar_lea.vmem %s29_s25, 256  ;;  %p613_p6 = scmp.lt.s32.totalorder %s29_s25, %s29_s25 }
  0x2f   :  { %p609_p5 = scmp.ne.s32.totalorder %s29_s25, %s608_s3  ;;  %p614_p7 = scmp.lt.s32.totalorder %s608_s3, %s608_s3 }
  0x31   :  { %p615_p8 = por %p614_p7, %p613_p6 }
  0x33   :  { %p616_p9 = pnand %p615_p8, %p609_p5 }
  0x35   :  { %619 = shalt.err (!%p616_p9)
}
  0x36   :  { %34 = dma.hbm_to_vmem [thread:$0]  %s1013_s0, 256, %s29_s25, [#allocation3], %s766_s29, %s766_s29, %s767_s30  }
  0x37   :  { %s620_s23 = scalar_lea.hbm %s1015_s2, 256 }
  0x38   :  { %p621_p10 = scmp.ne.s32.totalorder %s1015_s2, %s620_s23  ;;  %p624_p11 = scmp.lt.u32.totalorder %s620_s23, %s1015_s2 }
  0x3a   :  { %p626_p12 = pnand %p624_p11, %p621_p10 }
  0x3c   :  { %629 = shalt.err (!%p626_p12)
}
  0x3d   :  { %s630_s28 = scalar_lea.vmem %s872_s27, 256  ;;  %p635_p0 = scmp.lt.s32.totalorder %s872_s27, %s872_s27 }
  0x3e   :  { %p631_p13 = scmp.ne.s32.totalorder %s872_s27, %s630_s28  ;;  %p636_p1 = scmp.lt.s32.totalorder %s630_s28, %s630_s28 }
  0x40   :  { %p637_p2 = por %p636_p1, %p635_p0 }
  0x42   :  { %p638_p3 = pnand %p637_p2, %p631_p13 }
  0x44   :  { %641 = shalt.err (!%p638_p3)
}
  0x45   :  { %58 = dma.hbm_to_vmem [thread:$0]  %s1015_s2, 256, %s872_s27, [#allocation6], %s766_s29, %s766_s29, %s767_s30  }
  0x46   :  { %s770_s12 = smov [#allocation10]   ;;  %s771_s14 = smov [#allocation11]  }
  0x47   :  { %s76_s13 = sshll.u32 %s770_s12, 4  ;;  %s88_s15 = sshll.u32 %s771_s14, 4  ;;  %s77_s13 = int_to_ptr.vmem [resolvable:$true] %s76_s13  ;;  %s909_s15 = int_to_ptr.vmem [resolvable:$true] %s88_s15 }
  0x48   :  { %s642_s3 = scalar_lea.hbm %s1017_s4, 512 }
  0x49   :  { %p643_p4 = scmp.ne.s32.totalorder %s1017_s4, %s642_s3  ;;  %p646_p5 = scmp.lt.u32.totalorder %s642_s3, %s1017_s4 }
  0x4b   :  { %p648_p6 = pnand %p646_p5, %p643_p4 }
  0x4d   :  { %651 = shalt.err (!%p648_p6)
}
  0x4e   :  { %s652_s2 = scalar_lea.vmem %s77_s13, 512  ;;  %p657_p8 = scmp.lt.s32.totalorder %s77_s13, %s77_s13 }
  0x4f   :  { %p653_p7 = scmp.ne.s32.totalorder %s77_s13, %s652_s2  ;;  %p658_p9 = scmp.lt.s32.totalorder %s652_s2, %s652_s2 }
  0x51   :  { %p659_p10 = por %p658_p9, %p657_p8 }
  0x53   :  { %p660_p11 = pnand %p659_p10, %p653_p7 }
  0x55   :  { %663 = shalt.err (!%p660_p11)
}
  0x56   :  { %82 = dma.hbm_to_vmem [thread:$0]  %s1017_s4, 512, %s77_s13, [#allocation9], %s766_s29, %s766_s29, %s767_s30  }
  0x57   :  { %s664_s24 = scalar_lea.hbm %s1018_s5, 512 }
  0x58   :  { %p665_p12 = scmp.ne.s32.totalorder %s1018_s5, %s664_s24  ;;  %p668_p13 = scmp.lt.u32.totalorder %s664_s24, %s1018_s5 }
  0x5a   :  { %p670_p0 = pnand %p668_p13, %p665_p12 }
  0x5c   :  { %673 = shalt.err (!%p670_p0)
}
  0x5d   :  { %s674_s12 = scalar_lea.vmem %s909_s15, 512  ;;  %p679_p2 = scmp.lt.s32.totalorder %s909_s15, %s909_s15 }
  0x5e   :  { %p675_p1 = scmp.ne.s32.totalorder %s909_s15, %s674_s12  ;;  %p680_p3 = scmp.lt.s32.totalorder %s674_s12, %s674_s12 }
  0x60   :  { %p681_p4 = por %p680_p3, %p679_p2 }
  0x62   :  { %p682_p5 = pnand %p681_p4, %p675_p1 }
  0x64   :  { %685 = shalt.err (!%p682_p5)
}
  0x65   :  { %94 = dma.hbm_to_vmem [thread:$0]  %s1018_s5, 512, %s909_s15, [#allocation12], %s766_s29, %s766_s29, %s767_s30  }
  0x66   :  { %752 = dma.done.wait [#allocation3], 256  }
  0x67   :  { %753 = vsyncadd [#allocation3], 4294967040 }
  0x68   :  { %754 = dma.done.wait [#allocation6], 512  }
  0x69   :  { %755 = vsyncadd [#allocation6], 4294966784 }
  0x6a   :  { %756 = dma.done.wait [#allocation9], 1024  }
  0x6b   :  { %757 = vsyncadd [#allocation9], 4294966272 }
  0x6c   :  { %758 = dma.done.wait [#allocation12], 512  }
  0x6d   :  { %759 = vsyncadd [#allocation12], 4294966784  ;;  %v121_v0 = vld [vmem:[#allocation8] sm:$0xff]  ;;  %v122_v1 = vld [vmem:[#allocation8 + $0x8] sm:$0xff]  ;;  %vm132_vm0 = vcmask 261120   ;;  %s772_s17 = smov [#allocation13]  }
  0x6e   :  { %v123_v2 = vld [vmem:[#allocation8 + $0x10] sm:$0xff]  ;;  %v519_v3 = vpack.c.bf16 %v122_v1, %v121_v0  ;;  %v124_v4 = vld [vmem:[#allocation8 + $0x18] sm:$0xff]  ;;  %v218_v5 = vld [vmem:[#allocation10] sm:$0xff]  ;;  %s413_s3 = sshll.u32 %s772_s17, 4  ;;  %s773_s20 = smov [#allocation14]   ;;  %s414_s3 = int_to_ptr.vmem [resolvable:$true] %s413_s3 }
  0x6f   :  { %v219_v6 = vld [vmem:[#allocation10 + $0x8] sm:$0xff]  ;;  %v523_v7 = vpack.c.bf16 %v124_v4, %v123_v2  ;;  %v119_v9 = vld [vmem:[#allocation2] sm:$0xff]  ;;  %v314_v10 = vld [vmem:[#allocation11] sm:$0xff]  ;;  %s425_s19 = sshll.u32 %s773_s20, 4  ;;  %s686_s21 = scalar_lea.vmem %s414_s3, 256  ;;  %s958_s19 = int_to_ptr.vmem [resolvable:$true] %s425_s19 }
  0x70   :  { %v527_v8 = vpack.c.bf16 %v219_v6, %v218_v5  ;;  %520 = vmatprep.subr.bf16.mxu0 %v519_v3  ;;  %494 = vmatprep.mubr.msk.f32.mxu0 %vm132_vm0, %v119_v9  ;;  %v315_v11 = vld [vmem:[#allocation11 + $0x8] sm:$0xff]  ;;  %v220_v12 = vld [vmem:[#allocation10 + $0x10] sm:$0xff]  ;;  %v221_v13 = vld [vmem:[#allocation10 + $0x18] sm:$0xff]  ;;  %p687_p6 = scmp.ne.s32.totalorder %s414_s3, %s686_s21  ;;  %p691_p7 = scmp.lt.s32.totalorder %s414_s3, %s414_s3 }
  0x71   :  { %522 = vmatpush3.bf16.msra.mxu0 %v519_v3  ;;  %v531_v14 = vpack.c.bf16 %v221_v13, %v220_v12  ;;  %v216_v15 = vld [vmem:[#allocation5] sm:$0xff]  ;;  %v535_v16 = vpack.c.bf16 %v315_v11, %v314_v10  ;;  %v316_v17 = vld [vmem:[#allocation11 + $0x10] sm:$0xff]  ;;  %v317_v18 = vld [vmem:[#allocation11 + $0x18] sm:$0xff]  ;;  %p692_p8 = scmp.lt.s32.totalorder %s686_s21, %s686_s21 }
  0x72   :  { %528 = vmatprep.subr.bf16.mxu1 %v527_v8  ;;  %524 = vmatprep.subr.bf16.mxu0 %v523_v7  ;;  %v120_v19 = vld [vmem:[#allocation2 + $0x8] sm:$0xff]  ;;  %v539_v20 = vpack.c.bf16 %v317_v18, %v316_v17  ;;  %v217_v21 = vld [vmem:[#allocation5 + $0x8] sm:$0xff]  ;;  %v312_v22 = vld [vmem:[#allocation7] sm:$0xff] }
  0x73   :  { %530 = vmatpush3.bf16.msra.mxu1 %v527_v8  ;;  %505 = vmatprep.mubr.msk.f32.mxu1 %vm132_vm0, %v216_v15  ;;  %v313_v23 = vld [vmem:[#allocation7 + $0x8] sm:$0xff]  ;;  %v459_v24 = vld [vmem:[%s1019_s6] ss:$0 sm:$0xff]  ;;  %p693_p9 = por %p692_p8, %p691_p7 }
  0x74   :  { %532 = vmatprep.subr.bf16.mxu1 %v531_v14  ;;  %v462_v25 = vld [vmem:[%s1020_s7] ss:$0 sm:$0xff] }
  0x75   :  { %526 = vmatpush3.bf16.msra.mxu0 %v523_v7  ;;  %v465_v34 = vld [vmem:[%s1021_s8] ss:$0 sm:$0xff]  ;;  %p694_p10 = pnand %p693_p9, %p687_p6 }
  0x76   :  { %536 = vmatprep.subr.bf16.mxu0 %v535_v16 }
  0x77   :  { %534 = vmatpush3.bf16.msra.mxu1 %v531_v14 }
  0x78   :  { %495 = vmatmul.mubr.msk.f32.vlgmr.msra.gmra.mrb[0].mxu0 %vm132_vm0, %v120_v19 }
  0x79   :  { %538 = vmatpush3.bf16.msra.mxu0 %v535_v16  ;;  %516 = vmatprep.mubr.msk.f32.mxu0 %vm132_vm0, %v312_v22 }
  0x7a   :  { %506 = vmatmul.mubr.msk.f32.vlgmr.msra.gmra.mrb[0].mxu1 %vm132_vm0, %v217_v21  ;;  %540 = vmatprep.subr.bf16.mxu0 %v539_v20 }
  0x7d   :  { %542 = vmatpush3.bf16.msra.mxu0 %v539_v20 }
  0x80   :  { %517 = vmatmul.mubr.msk.f32.vlgmr.msra.gmra.mrb[2].mxu0 %vm132_vm0, %v313_v23 }
 0x14b   :  { %v496_v26 = vpop.f32.mrb[0].mxu0 }
 0x14c   :  { %v211_v27 = vadd.f32 %v496_v26, %v459_v24  ;;  %v205_v28 = vpop.f32.mrb[1].mxu0 }
 0x14d   :  { %v507_v29 = vpop.f32.mrb[0].mxu1  ;;  %v206_v30 = vadd.f32 %v459_v24, %v205_v28 }
 0x14e   :  { %v307_v31 = vadd.f32 %v507_v29, %v462_v25  ;;  %v301_v32 = vpop.f32.mrb[1].mxu1  ;;  %215 = vst [vmem:[#allocation13 + $0x8] sm:$0xff] %v211_v27 }
 0x14f   :  { %v302_v33 = vadd.f32 %v462_v25, %v301_v32  ;;  %214 = vst [vmem:[#allocation13] sm:$0xff] %v206_v30 }
 0x150   :  { %311 = vst [vmem:[#allocation14 + $0x8] sm:$0xff] %v307_v31 }
 0x151   :  { %310 = vst [vmem:[#allocation14] sm:$0xff] %v302_v33 }
 0x152   :  { %697 = shalt.err (!%p694_p10)
}
 0x153   :  { %s698_s27 = scalar_lea.hbm %s1022_s9, 256 }
 0x154   :  { %p699_p11 = scmp.ne.s32.totalorder %s1022_s9, %s698_s27  ;;  %p702_p12 = scmp.lt.u32.totalorder %s698_s27, %s1022_s9 }
 0x156   :  { %p704_p13 = pnand %p702_p12, %p699_p11 }
 0x158   :  { %707 = shalt.err (!%p704_p13)
}
 0x159   :  { %419 = dma.vmem_to_hbm [thread:$0]  %s414_s3, 256, %s1022_s9, [#allocation4], %s766_s29, %s766_s29, %s767_s30  }
 0x15a   :  { %s708_s28 = scalar_lea.vmem %s958_s19, 256  ;;  %p713_p1 = scmp.lt.s32.totalorder %s958_s19, %s958_s19 }
 0x15b   :  { %p709_p0 = scmp.ne.s32.totalorder %s958_s19, %s708_s28  ;;  %p714_p2 = scmp.lt.s32.totalorder %s708_s28, %s708_s28 }
 0x15d   :  { %p715_p3 = por %p714_p2, %p713_p1 }
 0x15f   :  { %p716_p4 = pnand %p715_p3, %p709_p0 }
 0x161   :  { %719 = shalt.err (!%p716_p4)
}
 0x162   :  { %s720_s12 = scalar_lea.hbm %s1023_s10, 256 }
 0x163   :  { %p721_p5 = scmp.ne.s32.totalorder %s1023_s10, %s720_s12  ;;  %p724_p6 = scmp.lt.u32.totalorder %s720_s12, %s1023_s10 }
 0x165   :  { %p726_p7 = pnand %p724_p6, %p721_p5 }
 0x167   :  { %729 = shalt.err (!%p726_p7)
}
 0x168   :  { %431 = dma.vmem_to_hbm [thread:$0]  %s958_s19, 256, %s1023_s10, [#allocation15], %s766_s29, %s766_s29, %s767_s30   ;;  %v518_v35 = vpop.f32.mrb[2].mxu0 }
 0x169   :  { %s774_s16 = smov [#allocation16]   ;;  %v403_v36 = vadd.f32 %v518_v35, %v465_v34  ;;  %v397_v37 = vpop.f32.mrb[3].mxu0 }
 0x16a   :  { %s437_s17 = sshll.u32 %s774_s16, 4  ;;  %v398_v38 = vadd.f32 %v465_v34, %v397_v37  ;;  %s438_s17 = int_to_ptr.vmem [resolvable:$true] %s437_s17 }
 0x16b   :  { %407 = vst [vmem:[#allocation16 + $0x8] sm:$0xff] %v403_v36  ;;  %s730_s3 = scalar_lea.vmem %s438_s17, 256  ;;  %p735_p9 = scmp.lt.s32.totalorder %s438_s17, %s438_s17 }
 0x16c   :  { %406 = vst [vmem:[#allocation16] sm:$0xff] %v398_v38  ;;  %p731_p8 = scmp.ne.s32.totalorder %s438_s17, %s730_s3  ;;  %p736_p10 = scmp.lt.s32.totalorder %s730_s3, %s730_s3 }
 0x16e   :  { %p737_p11 = por %p736_p10, %p735_p9 }
 0x170   :  { %p738_p12 = pnand %p737_p11, %p731_p8 }
 0x172   :  { %741 = shalt.err (!%p738_p12)
}
 0x173   :  { %s742_s10 = scalar_lea.hbm %s1024_s11, 256 }
 0x174   :  { %p743_p13 = scmp.ne.s32.totalorder %s1024_s11, %s742_s10  ;;  %p746_p0 = scmp.lt.u32.totalorder %s742_s10, %s1024_s11 }
 0x176   :  { %p748_p1 = pnand %p746_p0, %p743_p13 }
 0x178   :  { %751 = shalt.err (!%p748_p1)
}
 0x179   :  { %443 = dma.vmem_to_hbm [thread:$0]  %s438_s17, 256, %s1024_s11, [#allocation15], %s766_s29, %s766_s29, %s767_s30  }
 0x17a   :  { %760 = dma.done.wait [#allocation4], 256  }
 0x17b   :  { %761 = vsyncadd [#allocation4], 4294967040 }
 0x17c   :  { %762 = dma.done.wait [#allocation15], 512  }
 0x17d   :  { %763 = vsyncadd [#allocation15], 4294966784 }
 0x17e   :  { %453 = vsyncpa [#allocation3], 1 }
 0x17f   :  { %454 = vsyncpa [#allocation6], 1 }
 0x180   :  { %455 = vsyncpa [#allocation9], 1 }
 0x181   :  { %456 = vsyncpa [#allocation12], 1 }
 0x182   :  { %457 = vsyncpa [#allocation4], 1 }
 0x183   :  { %458 = vsyncpa [#allocation15], 1 }

</bundles_post_ra>
